<compile_context>
chip_gen: v6e
topology: v6e:2x2x1
jax: 0.10.0
libtpu: 0.0.40
codegen_flags: <defaults>
</compile_context>

<pallas_src>
import functools

import jax
import jax.numpy as jnp
from jax.experimental import pallas as pl
from jax.experimental.pallas import tpu as pltpu


def _round_up(x, m):
    return ((x + m - 1) // m) * m


def _coord_encoder_kernel(boxes_ref, w1_ref, b1_ref, w2_ref, b2_ref, out_ref,
                          *, prepend_background, background_value):
    """Per-batch body.

    boxes_ref: (N, 4)        frame-0 boxes for this batch element
    w1_ref   : (4, Hp)       first Linear weight, center-of-mass pre-folded, zero-padded
    b1_ref   : (1, Hp)       first Linear bias (zero-padded)
    w2_ref   : (Hp, Sp)      second Linear weight (zero-padded)
    b2_ref   : (1, Sp)       second Linear bias (zero-padded)
    out_ref  : (N', Sp)      slots for this batch element (lane-dense slab)
    """
    boxes = boxes_ref[...].astype(jnp.float32)            # (N, 4)
    n_in = boxes.shape[0]
    n_out = out_ref.shape[0]

    if prepend_background:
        # boxes_full[0] = background, boxes_full[i] = boxes[i-1].
        # Expressed with ops that are always lowerable: a constant 0/1 shift
        # matrix (exact, MXU-trivial) plus a masked fill of row 0.
        r = jax.lax.broadcasted_iota(jnp.int32, (n_out, n_in), 0)
        c = jax.lax.broadcasted_iota(jnp.int32, (n_out, n_in), 1)
        shift = (r == c + 1).astype(jnp.float32)           # (N', N)
        shifted = jnp.dot(shift, boxes, preferred_element_type=jnp.float32)
        row = jax.lax.broadcasted_iota(jnp.int32, shifted.shape, 0)
        boxes_full = jnp.where(row == 0,
                               jnp.float32(background_value), shifted)
    else:
        boxes_full = boxes

    # Center-of-mass projection is already folded into w1 outside the kernel,
    # so the remaining work is just: Linear -> ReLU -> Linear on the MXU/VPU.
    h = jnp.dot(boxes_full, w1_ref[...], preferred_element_type=jnp.float32)
    h = jnp.maximum(h + b1_ref[...], 0.0)
    out = jnp.dot(h, w2_ref[...], preferred_element_type=jnp.float32)
    out = out + b2_ref[...]
    out_ref[...] = out.astype(out_ref.dtype)


def coordinate_encoder_state_init(inputs, params, *, prepend_background=True,
                                  center_of_mass=True, background_value=0.0):
    """JAX/Pallas equivalent of CoordinateEncoderStateInit.forward.

    inputs: (B, T, N, 4)
    params: dict with w1 (K,H), b1 (H,), w2 (H,S), b2 (S,)
            K = 2 if center_of_mass else 4
    returns slots: (B, N', S) with N' = N + 1 if prepend_background else N
    """
    B, T, N, C = inputs.shape
    assert C == 4, "expected 4 bounding-box coordinates"
    dtype = inputs.dtype

    w1, b1, w2, b2 = params["w1"], params["b1"], params["w2"], params["b2"]
    H = w1.shape[1]
    S = w2.shape[1]

    if center_of_mass:
        assert w1.shape[0] == 2, "embedding_transform in_dim mismatch"
        # y = (c0 + c2)/2, x = (c1 + c3)/2  ==  boxes @ pmat ; fold into w1.
        pmat = jnp.array([[0.5, 0.0],
                          [0.0, 0.5],
                          [0.5, 0.0],
                          [0.0, 0.5]], dtype=jnp.float32)      # (4, 2)
        w1_eff = pmat @ w1.astype(jnp.float32)                  # (4, H)
    else:
        assert w1.shape[0] == 4, "embedding_transform in_dim mismatch"
        w1_eff = w1.astype(jnp.float32)

    # Zero-pad hidden / slot dims to a full 128-lane width so all matmuls,
    # bias adds and the output store are lane-dense (unmasked vst).
    Hp = _round_up(H, 128)
    Sp = _round_up(S, 128)
    w1p = jnp.zeros((4, Hp), dtype).at[:, :H].set(w1_eff.astype(dtype))
    b1p = jnp.zeros((1, Hp), dtype).at[:, :H].set(b1.astype(dtype))
    w2p = jnp.zeros((Hp, Sp), dtype).at[:H, :S].set(w2.astype(dtype))
    b2p = jnp.zeros((1, Sp), dtype).at[:, :S].set(b2.astype(dtype))

    n_out = N + 1 if prepend_background else N

    kernel = functools.partial(
        _coord_encoder_kernel,
        prepend_background=prepend_background,
        background_value=float(background_value))

    out_padded = pl.pallas_call(
        kernel,
        out_shape=jax.ShapeDtypeStruct((B, n_out, Sp), dtype),
        grid_spec=pltpu.PrefetchScalarGridSpec(
            num_scalar_prefetch=0,
            grid=(B,),
            in_specs=[
                # Frame 0 only, per batch element: no wrapper slice, and the
                # T-1 unused frames are never DMA'd.
                pl.BlockSpec((pl.Squeezed(), pl.Squeezed(), N, 4),
                             lambda b: (b, 0, 0, 0)),
                # Weights: constant index_map -> stay resident across the grid.
                pl.BlockSpec((4, Hp), lambda b: (0, 0)),
                pl.BlockSpec((1, Hp), lambda b: (0, 0)),
                pl.BlockSpec((Hp, Sp), lambda b: (0, 0)),
                pl.BlockSpec((1, Sp), lambda b: (0, 0)),
            ],
            out_specs=pl.BlockSpec((pl.Squeezed(), n_out, Sp),
                                   lambda b: (b, 0, 0)),
        ),
        compiler_params=pltpu.CompilerParams(
            dimension_semantics=("parallel",)),
    )(inputs, w1p, b1p, w2p, b2p)

    return out_padded[:, :, :S] if Sp != S else out_padded


def _make_params(key, in_dim, hidden, slot_size, dtype=jnp.float32):
    """Deterministic init for embedding_transform = Linear -> ReLU -> Linear."""
    k1, k2 = jax.random.split(key)
    w1 = jax.random.normal(k1, (in_dim, hidden), dtype) * 0.1
    b1 = jnp.zeros((hidden,), dtype)
    w2 = jax.random.normal(k2, (hidden, slot_size), dtype) * 0.1
    b2 = jnp.zeros((slot_size,), dtype)
    return {"w1": w1, "b1": b1, "w2": w2, "b2": b2}


if __name__ == "__main__":
    key = jax.random.PRNGKey(0)
    k_in, k_par = jax.random.split(key)

    # Small shapes consistent with the module: (B, T, N_boxes, 4)
    B, T, N, HIDDEN, SLOT = 2, 3, 7, 32, 32
    PREPEND_BACKGROUND = True
    CENTER_OF_MASS = True
    BACKGROUND_VALUE = 0.0

    inputs = jax.random.uniform(k_in, (B, T, N, 4), dtype=jnp.float32)
    in_dim = 2 if CENTER_OF_MASS else 4
    params = _make_params(k_par, in_dim, HIDDEN, SLOT)

    slots = coordinate_encoder_state_init(
        inputs, params,
        prepend_background=PREPEND_BACKGROUND,
        center_of_mass=CENTER_OF_MASS,
        background_value=BACKGROUND_VALUE)
    slots = jax.block_until_ready(slots)

    # Pure-JAX reference reproducing the PyTorch module semantics exactly.
    boxes = inputs[:, 0]
    bg = jnp.full((B, 1, 4), BACKGROUND_VALUE, dtype=boxes.dtype)
    boxes = jnp.concatenate([bg, boxes], axis=1)
    y_pos = (boxes[:, :, 0] + boxes[:, :, 2]) / 2
    x_pos = (boxes[:, :, 1] + boxes[:, :, 3]) / 2
    coords = jnp.stack([y_pos, x_pos], axis=-1)
    h = jnp.maximum(coords @ params["w1"] + params["b1"], 0.0)
    ref = h @ params["w2"] + params["b2"]

    assert slots.shape == (B, N + 1, SLOT), slots.shape
    assert jnp.allclose(slots, ref, atol=1e-5, rtol=1e-5)
    print("KERNEL_OK")
</pallas_src>

<mosaic_0001>
module attributes {stable_mosaic.version = 11 : i64} {
  func.func @_coord_encoder_kernel(%arg0: i32, %arg1: memref<1x1x7x4xf32, #tpu.memory_space<vmem>>, %arg2: memref<4x128xf32, #tpu.memory_space<vmem>>, %arg3: memref<1x128xf32, #tpu.memory_space<vmem>>, %arg4: memref<128x128xf32, #tpu.memory_space<vmem>>, %arg5: memref<1x128xf32, #tpu.memory_space<vmem>>, %arg6: memref<1x8x128xf32, #tpu.memory_space<vmem>>) attributes {dimension_semantics = [#tpu.dimension_semantics<parallel>], iteration_bounds = array<i64: 2>, scalar_prefetch = 0 : i64, scratch_operands = 0 : i64, tpu.core_type = #tpu.core_type<tc>, window_params = [{transform_indices = @transform_0, window_bounds = array<i64: 1, 1, 7, 4>}, {pipeline_mode = #tpu.pipeline_mode<synchronous>, transform_indices = @transform_1, window_bounds = array<i64: 4, 128>}, {pipeline_mode = #tpu.pipeline_mode<synchronous>, transform_indices = @transform_2, window_bounds = array<i64: 1, 128>}, {pipeline_mode = #tpu.pipeline_mode<synchronous>, transform_indices = @transform_3, window_bounds = array<i64: 128, 128>}, {pipeline_mode = #tpu.pipeline_mode<synchronous>, transform_indices = @transform_4, window_bounds = array<i64: 1, 128>}, {transform_indices = @transform_5, window_bounds = array<i64: 1, 8, 128>}]} {
    %c0 = arith.constant 0 : index
    %c0_0 = arith.constant 0 : index
    %c0_1 = arith.constant 0 : index
    %c0_2 = arith.constant 0 : index
    %0 = vector.load %arg1[%c0, %c0_0, %c0_1, %c0_2] : memref<1x1x7x4xf32, #tpu.memory_space<vmem>>, vector<1x1x7x4xf32>
    %1 = vector.shape_cast %0 : vector<1x1x7x4xf32> to vector<7x4xf32>
    %2 = tpu.iota {dimensions = array<i32: 0>} : vector<8x7xi32>
    %3 = tpu.iota {dimensions = array<i32: 1>} : vector<8x7xi32>
    %c1_i32 = arith.constant 1 : i32
    %4 = vector.broadcast %c1_i32 : i32 to vector<8x7xi32>
    %5 = arith.addi %3, %4 : vector<8x7xi32>
    %6 = arith.cmpi eq, %2, %5 : vector<8x7xi32>
    %7 = arith.extui %6 : vector<8x7xi1> to vector<8x7xi32>
    %8 = arith.sitofp %7 : vector<8x7xi32> to vector<8x7xf32>
    %cst = arith.constant dense<0.000000e+00> : vector<8x4xf32>
    %9 = tpu.matmul %8, %1, %cst {dimension_numbers = #tpu.dot_dimension_numbers<[1], [0], [0], [1], [0, 0, 1, 1], [], []>} : vector<8x7xf32>, vector<7x4xf32>, vector<8x4xf32> -> vector<8x4xf32>
    %10 = tpu.iota {dimensions = array<i32: 0>} : vector<8x4xi32>
    %c0_i32 = arith.constant 0 : i32
    %11 = vector.broadcast %c0_i32 : i32 to vector<8x4xi32>
    %12 = arith.cmpi eq, %10, %11 : vector<8x4xi32>
    %cst_3 = arith.constant 0.000000e+00 : f32
    %13 = vector.broadcast %cst_3 : f32 to vector<8x4xf32>
    %14 = arith.select %12, %13, %9 : vector<8x4xi1>, vector<8x4xf32>
    %c0_4 = arith.constant 0 : index
    %c0_5 = arith.constant 0 : index
    %15 = vector.load %arg2[%c0_4, %c0_5] : memref<4x128xf32, #tpu.memory_space<vmem>>, vector<4x128xf32>
    %cst_6 = arith.constant dense<0.000000e+00> : vector<8x128xf32>
    %16 = tpu.matmul %14, %15, %cst_6 {dimension_numbers = #tpu.dot_dimension_numbers<[1], [0], [0], [1], [0, 0, 1, 1], [], []>} : vector<8x4xf32>, vector<4x128xf32>, vector<8x128xf32> -> vector<8x128xf32>
    %c0_7 = arith.constant 0 : index
    %c0_8 = arith.constant 0 : index
    %17 = vector.load %arg3[%c0_7, %c0_8] : memref<1x128xf32, #tpu.memory_space<vmem>>, vector<1x128xf32>
    %18 = vector.broadcast %17 : vector<1x128xf32> to vector<8x128xf32>
    %19 = arith.addf %16, %18 : vector<8x128xf32>
    %cst_9 = arith.constant 0.000000e+00 : f32
    %20 = vector.broadcast %cst_9 : f32 to vector<8x128xf32>
    %21 = arith.maximumf %19, %20 : vector<8x128xf32>
    %c0_10 = arith.constant 0 : index
    %c0_11 = arith.constant 0 : index
    %22 = vector.load %arg4[%c0_10, %c0_11] : memref<128x128xf32, #tpu.memory_space<vmem>>, vector<128x128xf32>
    %cst_12 = arith.constant dense<0.000000e+00> : vector<8x128xf32>
    %23 = tpu.matmul %21, %22, %cst_12 {dimension_numbers = #tpu.dot_dimension_numbers<[1], [0], [0], [1], [0, 0, 1, 1], [], []>} : vector<8x128xf32>, vector<128x128xf32>, vector<8x128xf32> -> vector<8x128xf32>
    %c0_13 = arith.constant 0 : index
    %c0_14 = arith.constant 0 : index
    %24 = vector.load %arg5[%c0_13, %c0_14] : memref<1x128xf32, #tpu.memory_space<vmem>>, vector<1x128xf32>
    %25 = vector.broadcast %24 : vector<1x128xf32> to vector<8x128xf32>
    %26 = arith.addf %23, %25 : vector<8x128xf32>
    %c0_15 = arith.constant 0 : index
    %c0_16 = arith.constant 0 : index
    %c0_17 = arith.constant 0 : index
    %27 = vector.load %arg6[%c0_15, %c0_16, %c0_17] : memref<1x8x128xf32, #tpu.memory_space<vmem>>, vector<1x8x128xf32>
    %28 = vector.shape_cast %27 : vector<1x8x128xf32> to vector<8x128xf32>
    %29 = vector.shape_cast %26 : vector<8x128xf32> to vector<1x8x128xf32>
    tpu.vector_store %arg6[%c0_15, %c0_16, %c0_17], %29 {strides = array<i32>} : memref<1x8x128xf32, #tpu.memory_space<vmem>>, vector<1x8x128xf32>,
    return
  }
  func.func @transform_0(%arg0: i32) -> (i32, i32, i32, i32) {
    %c0_i32 = arith.constant 0 : i32
    %c0_i32_0 = arith.constant 0 : i32
    %c0_i32_1 = arith.constant 0 : i32
    %c0_i32_2 = arith.constant 0 : i32
    return %arg0, %c0_i32, %c0_i32_0, %c0_i32_1 : i32, i32, i32, i32
  }
  func.func @transform_1(%arg0: i32) -> (i32, i32) {
    %c0_i32 = arith.constant 0 : i32
    %c0_i32_0 = arith.constant 0 : i32
    %c0_i32_1 = arith.constant 0 : i32
    return %c0_i32, %c0_i32_0 : i32, i32
  }
  func.func @transform_2(%arg0: i32) -> (i32, i32) {
    %c0_i32 = arith.constant 0 : i32
    %c0_i32_0 = arith.constant 0 : i32
    %c0_i32_1 = arith.constant 0 : i32
    return %c0_i32, %c0_i32_0 : i32, i32
  }
  func.func @transform_3(%arg0: i32) -> (i32, i32) {
    %c0_i32 = arith.constant 0 : i32
    %c0_i32_0 = arith.constant 0 : i32
    %c0_i32_1 = arith.constant 0 : i32
    return %c0_i32, %c0_i32_0 : i32, i32
  }
  func.func @transform_4(%arg0: i32) -> (i32, i32) {
    %c0_i32 = arith.constant 0 : i32
    %c0_i32_0 = arith.constant 0 : i32
    %c0_i32_1 = arith.constant 0 : i32
    return %c0_i32, %c0_i32_0 : i32, i32
  }
  func.func @transform_5(%arg0: i32) -> (i32, i32, i32) {
    %c0_i32 = arith.constant 0 : i32
    %c0_i32_0 = arith.constant 0 : i32
    %c0_i32_1 = arith.constant 0 : i32
    return %arg0, %c0_i32, %c0_i32_0 : i32, i32, i32
  }
}

</mosaic_0001>

<bundles_post_ra>
// kernel: tpu_custom_call.1
= control target key start
LH: loop header
LB: loop body
LE: loop exit
PB: predicated region body
PF: predicated region fallthrough
CT: control target
= control target key end

     0   :  { %10 = vsyncpa [#allocation3], 0  ;;  %s1006_s0 = inlined_call_operand.vmem [shape: f32[2,3,7,4], index: 0, kind: input, shape index: {}]   ;;  %s1007_s1 = inlined_call_operand.vmem [shape: f32[4,128], index: 1, kind: input, shape index: {}]   ;;  %s1008_s2 = inlined_call_operand.vmem [shape: f32[1,128], index: 2, kind: input, shape index: {}]   ;;  %s1009_s3 = inlined_call_operand.hbm [shape: f32[128,128], index: 3, kind: input, shape index: {}]   ;;  %s1010_s4 = inlined_call_operand.vmem [shape: f32[1,128], index: 4, kind: input, shape index: {}]   ;;  %s1011_s5 = inlined_call_operand.hbm [shape: f32[2,8,128], index: 5, kind: output, shape index: {}]  }
   0x1   :  { %11 = vsyncpa [#allocation4], 0 }
   0x2   :  { %13 = vsyncpa [#allocation4 + $0x1], 0  ;;  %s861_s18 = smov 0   ;;  %s863_s19 = smov 0  }
   0x3   :  { %s865_s20 = smov 0   ;;  %s867_s21 = smov 0  }
   0x4 LB: > { %s882_s22 = sadd.s32 4294967295, %s823_s21   ;;  %s593_s23 = sadd.s32 4294967294, %s823_s21   ;;  %s823_s21 = sphi %s867_s21, %s1019_s21   ;;  %s819_s20 = sphi %s865_s20, %s1018_s20   ;;  %s815_s19 = sphi %s863_s19, %s1017_s19   ;;  %s811_s18 = sphi %s861_s18, %s1016_s18  }
   0x5   : > { %s886_s24 = sadd.s32 1, %s823_s21   ;;  %s136_s25 = sadd.s32 1, %s819_s20 }
   0x6   : > { %s133_s26 = ssub.s32 %s823_s21, %s886_s24  ;;  %p146_p0 = scmp.ne.s32.totalorder %s819_s20, %s815_s19 }
   0x7   : > { %p134_p1 = scmp.eq.s32.totalorder %s133_s26, 0  ;;  %p147_p2 = scmp.eq.s32.totalorder %s882_s22, 1 }
   0x8   : > { %p152_p3 = scmp.ne.s32.totalorder %s815_s19, %s811_s18  ;;  %p153_p4 = scmp.eq.s32.totalorder %s593_s23, 1 }
   0x9   : > { %s897_s27 = scalar_select %p134_p1, %s819_s20, %s136_s25  }
   0xa   : > { %p899_p5 = por %p147_p2, %p146_p0  ;;  %p903_p6 = por %p153_p4, %p152_p3 }
   0xb   : > { %p594_p7 = scmp.ge.s32.totalorder %s823_s21, 1  ;;  %p160_p8 = scmp.lt.s32.totalorder %s823_s21, 3 }
   0xc   : > { %s1013_s29 = scalar_select %p903_p6, 1, 0 }
   0xd   : > { %p693_p9 = scmp.eq.s32.totalorder %s882_s22, 0  ;;  %p910_p10 = pnand %p594_p7, %p160_p8 }
   0xe   : > { %s825_s6 = smov [#allocation2]  }
   0xf   : > { %s178_s7 = sshll.u32 %s825_s6, 4  ;;  %p685_p11 = pneg %p910_p10  ;;  %s179_s7 = int_to_ptr.vmem [resolvable:$true] %s178_s7 }
  0x10   : > { %s744_s8 = scalar_lea.vmem %s179_s7, 2048  ;;  %p752_p3 = scmp.lt.s32.totalorder %s179_s7, %s179_s7 }
  0x11   : > { %p686_p12 = pnand %p693_p9, %p685_p11  ;;  %p745_p0 = scmp.ne.s32.totalorder %s179_s7, %s744_s8 }
  0x12   : > { %p753_p4 = scmp.lt.s32.totalorder %s744_s8, %s744_s8 }
  0x13   : > { %p735_p13 = pneg %p686_p12 }
  0x14   : > { %p754_p6 = por %p753_p4, %p752_p3 }
  0x15   : > { %p747_p1 = pnand %p745_p0, %p735_p13 }
  0x17   : > { %p748_p2 = pneg %p747_p1 }
  0x19   : > { %p755_p7 = pnand %p754_p6, %p748_p2 }
  0x1b   : > { %758 = shalt.err (!%p755_p7)
}
  0x1c   : > { %s826_s9 = smov 128   ;;  %s827_s10 = smov 8  }
  0x1d   : > { %688 = dma.hbm_to_vmem [thread:$0]  (!%p686_p12), %s1009_s3, 2048, %s179_s7, [#allocation3], %s826_s9, %s826_s9, %s827_s10  }
  0x1e   : > { %205 = sbr.rel (%p910_p10) target bundleno = 644 (0x284), region = 40 }
  0x23   : > { %802 = dma.done.wait (%p693_p9), [#allocation3], 2048  }
  0x24   : > { %804 = vsyncadd (%p693_p9), [#allocation3], 4294965248  ;;  %p233_p8 = scmp.lt.s32.totalorder %s882_s22, 1  ;;  %v239_v0 = vlaneseq  ;;  %v828_v1 = vmov 0.0   ;;  %vm829_vm0 = vmmov 0   ;;  %vm251_vm1 = vcmask 1046528  }
  0x25   : > { %633 = vmatprep.subr.mxu1 %v828_v1  ;;  %635 = vmatprep.mubr.msk.f32.mxu1 %vm829_vm0, %v828_v1  ;;  %vm247_vm3 = vcmask 56320   ;;  %v327_v7 = vld [vmem:[%s1007_s1] sm:$0xf]  ;;  %vm339_vm4 = vcmask 1043456   ;;  %v429_v8 = vld [vmem:[#allocation2 + $0x78] sm:$0xff]  ;;  %v428_v9 = vld [vmem:[#allocation2 + $0x70] sm:$0xff] }
  0x26   : > { %s234_s13 = scalar_select %p233_p8, %s882_s22, 1  ;;  %v240_v2 = vshrl.u32 %v239_v0, 7  ;;  %v242_v3 = vand.u32 127, %v239_v0  ;;  %643 = vmatprep.subr.mxu0 %v828_v1  ;;  %675 = vmatprep.mubr.msk.f32.mxu0 %vm829_vm0, %v828_v1  ;;  %v427_v10 = vld [vmem:[#allocation2 + $0x68] sm:$0xff]  ;;  %v426_v11 = vld [vmem:[#allocation2 + $0x60] sm:$0xff]  ;;  %v425_v12 = vld [vmem:[#allocation2 + $0x58] sm:$0xff] }
  0x27   : > { %644 = vmatpush3.msra.mxu0 %v429_v8  ;;  %v424_v13 = vld [vmem:[#allocation2 + $0x50] sm:$0xff]  ;;  %v423_v14 = vld [vmem:[#allocation2 + $0x48] sm:$0xff]  ;;  %v422_v15 = vld [vmem:[#allocation2 + $0x40] sm:$0xff]  ;;  %vm335_vm6 = vcmask 31744   ;;  %s230_s6 = sand.u32 1, %s815_s19   ;;  %s609_s10 = sshll.u32 %s882_s22, 7 }
  0x28   : > { %s678_s14 = smul.u32 24, %s234_s13  ;;  %v243_v4 = vadd.s32 1, %v242_v3  ;;  %645 = vmatprep.subr.mxu0 %v828_v1  ;;  %v421_v16 = vld [vmem:[#allocation2 + $0x38] sm:$0xff]  ;;  %v420_v17 = vld [vmem:[#allocation2 + $0x30] sm:$0xff]  ;;  %v419_v18 = vld [vmem:[#allocation2 + $0x28] sm:$0xff]  ;;  %vm325_vm5 = vcmp.eq.s32.totalorder %v240_v2, 0  ;;  %s971_s15 = scalar_lea.hbm %s1011_s5, %s609_s10 }
  0x29   : > { %646 = vmatpush3.msra.mxu0 %v428_v9  ;;  %v418_v19 = vld [vmem:[#allocation2 + $0x20] sm:$0xff]  ;;  %v417_v20 = vld [vmem:[#allocation2 + $0x18] sm:$0xff]  ;;  %v416_v24 = vld [vmem:[#allocation2 + $0x10] sm:$0xff]  ;;  %s599_s7 = sshll.u32 %s230_s6, 3  ;;  %s509_s16 = scalar_lea.sflag [#allocation4], %s230_s6 }
  0x2a   : > { %s237_s17 = scalar_lea.vmem %s1006_s0, %s678_s14  ;;  %vm244_vm2 = vcmp.eq.s32.totalorder %v240_v2, %v243_v4  ;;  %647 = vmatprep.subr.mxu0 %v828_v1  ;;  %v415_v25 = vld [vmem:[#allocation2 + $0x8] sm:$0xff]  ;;  %v414_v26 = vld [vmem:[#allocation2] sm:$0xff]  ;;  %s232_s11 = scalar_lea.vmem [#allocation5], %s599_s7 }
  0x2b   : > { %v238_v5 = vld [vmem:[%s237_s17] sm:$0x7f]  ;;  %v601_v6 = vsel %vm244_vm2, 1.0, %v828_v1  ;;  %648 = vmatpush3.msra.mxu0 %v427_v10  ;;  %s522_s12 = sshll.u32 %s232_s11, 4  ;;  %s830_s23 = smov [#allocation5]   ;;  %s523_s12 = int_to_ptr.vmem [resolvable:$true] %s522_s12 }
  0x2c   : > { %634 = vmatpush3.msk.msra.mxu1 %vm251_vm1, %v238_v5  ;;  %649 = vmatprep.subr.mxu0 %v828_v1  ;;  %v604_v27 = vld [vmem:[%s1008_s2] ss:$0 sm:$0xff]  ;;  %s759_s17 = scalar_lea.vmem %s523_s12, 128  ;;  %s763_s22 = sshll.u32 %s830_s23, 4  ;;  %s764_s22 = int_to_ptr.vmem [resolvable:$false] %s763_s22 }
  0x2d   : > { %636 = vmatmul.mubr.msk.f32.vlgmr.msra.gmra.mxu1 %vm247_vm3, %v601_v6  ;;  %638 = vmatprep.subr.mxu1 %v828_v1  ;;  %v607_v32 = vld [vmem:[%s1010_s4] ss:$0 sm:$0xff]  ;;  %p760_p6 = scmp.ne.s32.totalorder %s523_s12, %s759_s17  ;;  %s765_s25 = scalar_lea.vmem %s764_s22, 256 }
  0x2e   : > { %639 = vmatpush3.msk.msra.mxu1 %vm339_vm4, %v327_v7  ;;  %640 = vmatprep.mubr.msk.f32.mxu1 %vm829_vm0, %v828_v1  ;;  %p766_p11 = scmp.lt.s32.totalorder %s523_s12, %s764_s22  ;;  %p767_p12 = scmp.lt.s32.totalorder %s765_s25, %s759_s17 }
  0x2f   : > { %650 = vmatpush3.msra.mxu0 %v426_v11  ;;  %p761_p9 = pnand %p760_p6, %p899_p5 }
  0x30   : > { %651 = vmatprep.subr.mxu0 %v828_v1  ;;  %p768_p13 = por %p767_p12, %p766_p11 }
  0x31   : > { %652 = vmatpush3.msra.mxu0 %v425_v12  ;;  %p762_p10 = pneg %p761_p9 }
  0x32   : > { %653 = vmatprep.subr.mxu0 %v828_v1 }
  0x33   : > { %654 = vmatpush3.msra.mxu0 %v424_v13  ;;  %p769_p0 = pnand %p768_p13, %p762_p10 }
  0x34   : > { %655 = vmatprep.subr.mxu0 %v828_v1 }
  0x35   : > { %656 = vmatpush3.msra.mxu0 %v423_v14 }
  0x36   : > { %657 = vmatprep.subr.mxu0 %v828_v1 }
  0x37   : > { %658 = vmatpush3.msra.mxu0 %v422_v15 }
  0x38   : > { %659 = vmatprep.subr.mxu0 %v828_v1 }
  0x39   : > { %660 = vmatpush3.msra.mxu0 %v421_v16 }
  0x3a   : > { %661 = vmatprep.subr.mxu0 %v828_v1 }
  0x3b   : > { %662 = vmatpush3.msra.mxu0 %v420_v17 }
  0x3c   : > { %663 = vmatprep.subr.mxu0 %v828_v1 }
  0x3d   : > { %664 = vmatpush3.msra.mxu0 %v419_v18 }
  0x3e   : > { %665 = vmatprep.subr.mxu0 %v828_v1 }
  0x3f   : > { %666 = vmatpush3.msra.mxu0 %v418_v19 }
  0x40   : > { %667 = vmatprep.subr.mxu0 %v828_v1 }
  0x41   : > { %668 = vmatpush3.msra.mxu0 %v417_v20 }
  0x42   : > { %669 = vmatprep.subr.mxu0 %v828_v1 }
  0x43   : > { %670 = vmatpush3.msra.mxu0 %v416_v24 }
  0x44   : > { %671 = vmatprep.subr.mxu0 %v828_v1 }
  0x45   : > { %672 = vmatpush3.msra.mxu0 %v415_v25 }
  0x46   : > { %673 = vmatprep.subr.mxu0 %v828_v1 }
  0x47   : > { %674 = vmatpush3.msra.mxu0 %v414_v26 }
  0xed   : > { %v321_v21 = vpop.f32.mrf.mxu1 }
  0xee   : > { %v326_v22 = vsel %vm325_vm5, 0.0, %v321_v21 }
  0xef   : > { %v637_v23 = vpop.f32.mrf.mxu1  ;;  %641 = vmatmul.mubr.msk.f32.vlgmr.msra.gmra.mxu1 %vm335_vm6, %v326_v22 }
 0x1af   : > { %v409_v28 = vpop.f32.mrf.mxu1 }
 0x1b0   : > { %v410_v29 = vadd.f32 %v604_v27, %v409_v28 }
 0x1b1   : > { %v642_v30 = vpop.f32.mrf.mxu1 }
 0x1b2   : > { %v413_v31 = vmax.f32 %v410_v29, 0.0 }
 0x1b4   : > { %676 = vmatmul.mubr.f32.vlgmr.msra.gmra.mxu0 %v413_v31 }
 0x274   : > { %v503_v33 = vpop.f32.mrf.mxu0 }
 0x275   : > { %v504_v34 = vadd.f32 %v607_v32, %v503_v33 }
 0x276   : > { %v677_v35 = vpop.f32.mrf.mxu0 }
 0x277   : > { %507 = vst [vmem:[%s232_s11] sm:$0xff] %v504_v34 }
 0x278   : > { %772 = shalt.err (!%p769_p0)
}
 0x279   : > { %s773_s26 = scalar_lea.hbm %s971_s15, 128  ;;  %s777_s7 = scalar_lea.hbm %s1011_s5, 256 }
 0x27a   : > { %p774_p1 = scmp.ne.s32.totalorder %s971_s15, %s773_s26  ;;  %p778_p4 = scmp.lt.s32.totalorder %s971_s15, %s1011_s5 }
 0x27b   : > { %p779_p7 = scmp.lt.s32.totalorder %s777_s7, %s773_s26 }
 0x27c   : > { %p775_p2 = pnand %p774_p1, %p899_p5 }
 0x27d   : > { %p780_p8 = por %p779_p7, %p778_p4 }
 0x27e   : > { %p776_p3 = pneg %p775_p2 }
 0x280   : > { %p781_p6 = pnand %p780_p8, %p776_p3 }
 0x282   : > { %784 = shalt.err (!%p781_p6)
}
 0x283   : > { %683 = dma.vmem_to_hbm [thread:$0]  (%p899_p5), %s523_s12, 128, %s971_s15, %s509_s16  }
 0x284 PF: > { %p695_p9 = scmp.ge.s32.totalorder %s823_s21, 2  ;;  %s534_s10 = sand.u32 1, %s811_s18  }
 0x285   : > { %p1015_p10 = scmp.ne.s32.totalorder %s1013_s29, 0  ;;  %s535_s11 = scalar_lea.sflag [#allocation4], %s534_s10 }
 0x287   : > { %p690_p11 = pnand %p695_p9, %p1015_p10 }
 0x289   : > { %p691_p12 = pneg %p690_p11 }
 0x28b   : > { %806 = dma.done.wait (%p691_p12), %s535_s11, 128  }
 0x28c   : > { %808 = vsyncadd (%p691_p12), %s535_s11, 4294967168  ;;  %p16_p13 = scmp.ge.s32.totalorder %s886_s24, 4   ;;  %s1016_s18 = smov %s815_s19 }
 0x28d   : > { %s1017_s19 = smov %s819_s20  ;;  %s1018_s20 = smov %s897_s27 }
 0x28e   : > { %s1019_s21 = smov %s886_s24  ;;  %18 = sbr.rel (!%p16_p13) target bundleno = 4 (0x4), region = 80 }
 0x293   :  { %540 = vsyncpa [#allocation3], 1 }
 0x294   :  { %542 = vsyncpa [#allocation3 + $0x1], 1 }
 0x295   :  { %543 = vsyncpa [#allocation4], 1 }
 0x296   :  { %545 = vsyncpa [#allocation4 + $0x1], 1 }

</bundles_post_ra>
